<compile_context>
chip_gen: v7x
topology: tpu7x:2x2x1
jax: 0.10.0
libtpu: 0.0.40
codegen_flags: <defaults>
</compile_context>

<pallas_src>
import functools

import jax
import jax.numpy as jnp
from jax.experimental import pallas as pl
from jax.experimental.pallas import tpu as pltpu


_LANE = 128
_SUBLANE = 8
# Below this many input bytes, calling func directly in JAX (and letting XLA
# fuse it with neighbouring ops) beats paying pallas_call dispatch plus a
# standalone extra read+write pass.
_SMALL_INPUT_BYTES = 256 * 1024


def _lambda_kernel(x_ref, o_ref, *, func, kwargs):
    # Elementwise hot path: runs entirely on the current VMEM tile.
    o_ref[...] = func(x_ref[...], **kwargs).astype(o_ref.dtype)


def _is_dual_tensorcore():
    """True on chips with 2 TensorCores per chip (v7x).  Only there do extra
    grid steps buy parallelism; on single-TC chips the grid is a serial loop."""
    try:
        kind = jax.devices()[0].device_kind.lower()
    except Exception:
        return False
    return ("v7" in kind) or ("7x" in kind)


class PallasLambda:
    """Pallas equivalent of spex.Lambda: forward(x) == func(x, **kwargs).

    Elementwise funcs stream through a lane-dense (block_rows, 128) Pallas TPU
    kernel; non-shape-preserving funcs and tiny inputs fall back to calling
    `func` directly in JAX (still exact Lambda semantics, just no kernel).
    """

    # Tunable: inputs smaller than this bypass the kernel entirely.
    min_kernel_bytes = _SMALL_INPUT_BYTES

    def __init__(self, func, **kwargs):
        self.func = func
        self.kwargs = kwargs

    def _apply(self, x):
        return self.func(x, **self.kwargs)

    def __call__(self, x):
        x = jnp.asarray(x)
        orig_shape = x.shape
        n = x.size
        in_item = jnp.dtype(x.dtype).itemsize

        # Empty / tiny inputs: plain JAX (dispatch overhead + lost fusion
        # would dominate any kernel benefit).
        if n == 0 or n * in_item < self.min_kernel_bytes:
            return self._apply(x)

        # Trace func's output aval.  If func is not shape-preserving it cannot
        # be elementwise -> direct call (correct, just not a Pallas kernel).
        # TODO(synk): shape-preserving but non-elementwise funcs (e.g. softmax
        # over an axis) are not detectable here and must not use this wrapper.
        try:
            out_aval = jax.eval_shape(self._apply,
                                      jax.ShapeDtypeStruct(x.shape, x.dtype))
            same_shape = tuple(out_aval.shape) == tuple(orig_shape)
            out_dtype = jnp.dtype(out_aval.dtype)
        except Exception:
            return self._apply(x)
        if not same_shape:
            return self._apply(x)
        out_item = out_dtype.itemsize

        flat = jnp.ravel(x)                    # free for contiguous arrays
        rows = n // _LANE                      # number of full 128-lane rows
        rem = n - rows * _LANE                 # < 128 leftover elements

        if rows == 0:
            return self._apply(x)              # less than one lane row

        # -------- generation-aware block / grid policy --------
        if _is_dual_tensorcore():              # v7x: 2 TCs, 3.2 TB/s, 64 MiB VMEM
            target_bytes = 8 * 1024 * 1024     # input bytes per grid step
            floor_bytes = 2 * 1024 * 1024      # never shrink blocks below this
            vmem_limit = 40 << 20              # 2*(8+8) MiB buffers + headroom
            min_steps = 4                      # shard parallel axis over 2 TCs
        else:                                  # v5e / v6e: single TC
            target_bytes = 4 * 1024 * 1024     # measured tile-size plateau
            floor_bytes = None
            vmem_limit = None
            min_steps = 1                      # serial grid: fewer, bigger steps

        # Sub-32-bit dtypes pack 2/4 rows per sublane: align block rows to the
        # packed tile height for both the input and the output dtype.
        row_align = max(_SUBLANE, 32 // in_item, 32 // out_item)

        bytes_per_row = _LANE * (in_item + out_item)
        block_rows = max(2 * target_bytes // bytes_per_row, row_align)
        if min_steps > 1:
            want = max(pl.cdiv(rows, min_steps), row_align)
            floor_rows = max(2 * floor_bytes // bytes_per_row, row_align)
            block_rows = min(block_rows, max(want, floor_rows))
        block_rows = pl.cdiv(block_rows, row_align) * row_align
        if rows <= block_rows:
            block_rows = rows                  # single block == full slab extent
        grid = (pl.cdiv(rows, block_rows),)

        kernel = functools.partial(_lambda_kernel, func=self.func,
                                   kwargs=self.kwargs)
        cp_kwargs = dict(dimension_semantics=("parallel",))
        if vmem_limit is not None:
            cp_kwargs["vmem_limit_bytes"] = vmem_limit

        # Kernel runs over the UNPADDED (rows, 128) slab; a non-divisible last
        # block is handled by Pallas's ragged-block masking (no jnp.pad of the
        # whole array, no output slice -> no extra HBM passes).
        main = flat.reshape(rows, _LANE) if rem == 0 \
            else flat[: rows * _LANE].reshape(rows, _LANE)

        out2d = pl.pallas_call(
            kernel,
            out_shape=jax.ShapeDtypeStruct((rows, _LANE), out_dtype),
            grid=grid,
            in_specs=[pl.BlockSpec((block_rows, _LANE), lambda i: (i, 0))],
            out_specs=pl.BlockSpec((block_rows, _LANE), lambda i: (i, 0)),
            compiler_params=pltpu.CompilerParams(**cp_kwargs),
        )(main)

        if rem == 0:
            return out2d.reshape(orig_shape)   # free reshape, no copy
        # <128-element lane remainder: tiny tail computed with plain jnp.
        tail = self._apply(flat[rows * _LANE:]).astype(out_dtype)
        return jnp.concatenate([out2d.reshape(-1), tail]).reshape(orig_shape)


if __name__ == "__main__":
    # Example Lambda: func(x, scale) = gelu(x) * scale
    func = lambda x, scale: jax.nn.gelu(x) * scale

    key = jax.random.PRNGKey(0)
    x = jax.random.normal(key, (2, 4, 16, 16), dtype=jnp.float32)   # NCHW
    ref = jax.nn.gelu(x) * 0.5

    # 1) Default instance: small input takes the JAX bypass path.
    lam = PallasLambda(func, scale=0.5)
    out = jax.block_until_ready(lam(x))
    assert out.shape == x.shape and out.dtype == x.dtype
    assert jnp.allclose(out, ref, atol=1e-5, rtol=1e-5)

    # 2) Force the Pallas kernel path on the same input (lane-aligned slab).
    lam_k = PallasLambda(func, scale=0.5)
    lam_k.min_kernel_bytes = 0
    out_k = jax.block_until_ready(lam_k(x))
    assert out_k.shape == x.shape and out_k.dtype == x.dtype
    assert jnp.allclose(out_k, ref, atol=1e-5, rtol=1e-5)

    # 3) Kernel path on a lane-misaligned shape (exercises ragged handling
    #    plus the <128-element tail computed outside the kernel).
    x_odd = jax.random.normal(jax.random.PRNGKey(1), (2, 3, 5, 7),
                              dtype=jnp.float32)
    out_odd = jax.block_until_ready(lam_k(x_odd))
    ref_odd = jax.nn.gelu(x_odd) * 0.5
    assert out_odd.shape == x_odd.shape and out_odd.dtype == x_odd.dtype
    assert jnp.allclose(out_odd, ref_odd, atol=1e-5, rtol=1e-5)

    print("KERNEL_OK")
</pallas_src>

<mosaic_0001>
module attributes {stable_mosaic.version = 11 : i64} {
  func.func @_lambda_kernel(%arg0: i32, %arg1: memref<16x128xf32, #tpu.memory_space<vmem>>, %arg2: memref<16x128xf32, #tpu.memory_space<vmem>>) attributes {dimension_semantics = [#tpu.dimension_semantics<parallel>], iteration_bounds = array<i64: 1>, scalar_prefetch = 0 : i64, scratch_operands = 0 : i64, tpu.core_type = #tpu.core_type<tc>, window_params = [{transform_indices = @transform_0, window_bounds = array<i64: 16, 128>}, {transform_indices = @transform_1, window_bounds = array<i64: 16, 128>}]} {
    %c0 = arith.constant 0 : index
    %c0_0 = arith.constant 0 : index
    %0 = vector.load %arg1[%c0, %c0_0] : memref<16x128xf32, #tpu.memory_space<vmem>>, vector<16x128xf32>
    %1 = arith.mulf %0, %0 : vector<16x128xf32>
    %2 = arith.mulf %0, %1 : vector<16x128xf32>
    %cst = arith.constant 4.471500e-02 : f32
    %3 = vector.broadcast %cst : f32 to vector<16x128xf32>
    %4 = arith.mulf %3, %2 : vector<16x128xf32>
    %5 = arith.addf %0, %4 : vector<16x128xf32>
    %cst_1 = arith.constant 0.797884583 : f32
    %6 = vector.broadcast %cst_1 : f32 to vector<16x128xf32>
    %7 = arith.mulf %6, %5 : vector<16x128xf32>
    %8 = math.tanh %7 : vector<16x128xf32>
    %cst_2 = arith.constant 1.000000e+00 : f32
    %9 = vector.broadcast %cst_2 : f32 to vector<16x128xf32>
    %10 = arith.addf %9, %8 : vector<16x128xf32>
    %cst_3 = arith.constant 5.000000e-01 : f32
    %11 = vector.broadcast %cst_3 : f32 to vector<16x128xf32>
    %12 = arith.mulf %11, %10 : vector<16x128xf32>
    %13 = arith.mulf %0, %12 : vector<16x128xf32>
    %cst_4 = arith.constant 5.000000e-01 : f32
    %14 = vector.broadcast %cst_4 : f32 to vector<16x128xf32>
    %15 = arith.mulf %13, %14 : vector<16x128xf32>
    %c0_5 = arith.constant 0 : index
    %c0_6 = arith.constant 0 : index
    %16 = vector.load %arg2[%c0_5, %c0_6] : memref<16x128xf32, #tpu.memory_space<vmem>>, vector<16x128xf32>
    tpu.vector_store %arg2[%c0_5, %c0_6], %15 {strides = array<i32>} : memref<16x128xf32, #tpu.memory_space<vmem>>, vector<16x128xf32>,
    return
  }
  func.func @transform_0(%arg0: i32) -> (i32, i32) {
    %c0_i32 = arith.constant 0 : i32
    %c0_i32_0 = arith.constant 0 : i32
    return %arg0, %c0_i32 : i32, i32
  }
  func.func @transform_1(%arg0: i32) -> (i32, i32) {
    %c0_i32 = arith.constant 0 : i32
    %c0_i32_0 = arith.constant 0 : i32
    return %arg0, %c0_i32 : i32, i32
  }
}

</mosaic_0001>

<bundles_post_ra>
// kernel: tpu_custom_call.1
= control target key start
LH: loop header
LB: loop body
LE: loop exit
PB: predicated region body
PF: predicated region fallthrough
CT: control target
= control target key end

     0   :  { %6 = vsyncpa [#allocation3], 0  ;;  %s164_s0 = inlined_call_operand.hbm [shape: f32[16,128], index: 0, kind: input, shape index: {}]   ;;  %s165_s1 = inlined_call_operand.hbm [shape: f32[16,128], index: 1, kind: output, shape index: {}]  }
   0x1   :  { %7 = vsyncpa [#allocation4], 0  ;;  %s120_s6 = smov [#allocation2]   ;;  %s72_s10 = scalar_lea.hbm %s164_s0, 256 }
   0x2   :  { %s13_s7 = sshll.u32 %s120_s6, 4  ;;  %p73_p0 = scmp.ne.s32.totalorder %s164_s0, %s72_s10  ;;  %s14_s7 = int_to_ptr.vmem [resolvable:$true] %s13_s7 }
   0x3   :  { %p76_p1 = scmp.lt.u32.totalorder %s72_s10, %s164_s0 }
   0x5   :  { %p78_p2 = pnand %p76_p1, %p73_p0 }
   0x7   :  { %81 = shalt.err (!%p78_p2)
}
   0x8   :  { %s82_s15 = scalar_lea.vmem %s14_s7, 256  ;;  %p87_p4 = scmp.lt.s32.totalorder %s14_s7, %s14_s7 }
   0x9   :  { %p83_p3 = scmp.ne.s32.totalorder %s14_s7, %s82_s15  ;;  %p88_p5 = scmp.lt.s32.totalorder %s82_s15, %s82_s15 }
   0xb   :  { %p89_p6 = por %p88_p5, %p87_p4 }
   0xd   :  { %p90_p7 = pnand %p89_p6, %p83_p3 }
   0xf   :  { %93 = shalt.err (!%p90_p7)
}
  0x10   :  { %s121_s16 = smov 128   ;;  %s122_s17 = smov 8  }
  0x11   :  { %19 = dma.hbm_to_vmem [thread:$0]  %s164_s0, 256, %s14_s7, [#allocation3], %s121_s16, %s121_s16, %s122_s17  }
  0x12   :  { %116 = dma.done.wait [#allocation3], 256  }
  0x13   :  { %117 = vsyncadd [#allocation3], 4294967040  ;;  %v23_v0 = vld [vmem:[#allocation2] sm:$0xff]  ;;  %v24_v1 = vld [vmem:[#allocation2 + $0x8] sm:$0xff]  ;;  %s123_s0 = smov [#allocation5]  }
  0x14   :  { %v25_v2 = vmul.f32 %v23_v0, %v23_v0  ;;  %v26_v3 = vmul.f32 %v24_v1, %v24_v1  ;;  %s52_s20 = sshll.u32 %s123_s0, 4  ;;  %s53_s20 = int_to_ptr.vmem [resolvable:$true] %s52_s20 }
  0x15   :  { %s94_s21 = scalar_lea.vmem %s53_s20, 256  ;;  %p99_p9 = scmp.lt.s32.totalorder %s53_s20, %s53_s20 }
  0x16   :  { %v27_v4 = vmul.f32 %v25_v2, %v23_v0  ;;  %v28_v5 = vmul.f32 %v26_v3, %v24_v1  ;;  %p95_p8 = scmp.ne.s32.totalorder %s53_s20, %s94_s21  ;;  %p100_p10 = scmp.lt.s32.totalorder %s94_s21, %s94_s21 }
  0x18   :  { %v29_v6 = vmul.f32 0.044715, %v27_v4  ;;  %v30_v7 = vmul.f32 0.044715, %v28_v5  ;;  %p101_p11 = por %p100_p10, %p99_p9 }
  0x1a   :  { %v31_v8 = vadd.f32 %v29_v6, %v23_v0  ;;  %v32_v9 = vadd.f32 %v30_v7, %v24_v1  ;;  %p102_p12 = pnand %p101_p11, %p95_p8 }
  0x1c   :  { %v33_v10 = vmul.f32 0.7978846, %v31_v8  ;;  %v34_v11 = vmul.f32 0.7978846, %v32_v9 }
  0x1e   :  { %68 = vtanh.f32 %v33_v10 }
  0x1f   :  { %70 = vtanh.f32 %v34_v11 }
  0x28   :  { %v69_v12 = vpop.eup %68 }
  0x29   :  { %v71_v13 = vpop.eup %70  ;;  %v37_v14 = vadd.f32 1.0, %v69_v12 }
  0x2a   :  { %v38_v15 = vadd.f32 1.0, %v71_v13 }
  0x2b   :  { %v39_v16 = vmul.f32 0.5, %v37_v14 }
  0x2c   :  { %v40_v17 = vmul.f32 0.5, %v38_v15 }
  0x2d   :  { %v41_v18 = vmul.f32 %v39_v16, %v23_v0 }
  0x2e   :  { %v42_v19 = vmul.f32 %v40_v17, %v24_v1 }
  0x2f   :  { %v43_v20 = vmul.f32 0.5, %v41_v18 }
  0x30   :  { %v44_v21 = vmul.f32 0.5, %v42_v19 }
  0x31   :  { %45 = vst [vmem:[#allocation5] sm:$0xff] %v43_v20 }
  0x32   :  { %46 = vst [vmem:[#allocation5 + $0x8] sm:$0xff] %v44_v21 }
  0x33   :  { %105 = shalt.err (!%p102_p12)
}
  0x34   :  { %s106_s24 = scalar_lea.hbm %s165_s1, 256 }
  0x35   :  { %p107_p13 = scmp.ne.s32.totalorder %s165_s1, %s106_s24  ;;  %p110_p0 = scmp.lt.u32.totalorder %s106_s24, %s165_s1 }
  0x37   :  { %p112_p1 = pnand %p110_p0, %p107_p13 }
  0x39   :  { %115 = shalt.err (!%p112_p1)
}
  0x3a   :  { %58 = dma.vmem_to_hbm [thread:$0]  %s53_s20, 256, %s165_s1, [#allocation4], %s121_s16, %s121_s16, %s122_s17  }
  0x3b   :  { %118 = dma.done.wait [#allocation4], 256  }
  0x3c   :  { %119 = vsyncadd [#allocation4], 4294967040 }
  0x3d   :  { %62 = vsyncpa [#allocation3], 1 }
  0x3e   :  { %63 = vsyncpa [#allocation4], 1 }

</bundles_post_ra>
